<compile_context>
chip_gen: v7x
topology: tpu7x:2x2x1
jax: 0.10.0
libtpu: 0.0.40
codegen_flags: <defaults>
</compile_context>

<pallas_src>
import functools
import math

import jax
import jax.numpy as jnp
from jax.experimental import pallas as pl
from jax.experimental.pallas import tpu as pltpu


def _merge_kernel(x_ref, ga_ref, gb_ref, ba_ref, bb_ref, wa_ref, wb_ref,
                  bias_ref, o_ref, *, eps, mxu_dtype):
    # x_ref : (tr, 2, Wo, 2C)   dim1 = row parity; last dim = [left|right] pixel channels
    # ga/gb : (1, 2C) gamma halves    ba/bb: (1, 2C) beta halves
    # wa/wb : (2C, 2C_out) weight row-halves     bias: (1, 2C_out)
    # o_ref : (tr*Wo, 2C_out)   lane/sublane-dense 2-D output block
    tr, _, wo, c2 = x_ref.shape
    tok = tr * wo

    xall = x_ref[...]
    # Merging (tr, Wo) into one token axis is a free view when Wo % 8 == 0;
    # otherwise it is a VMEM-local relayout (still far cheaper than HBM).
    xa = xall[:, 0, :, :].astype(jnp.float32).reshape(tok, c2)   # [x1|x2]
    xb = xall[:, 1, :, :].astype(jnp.float32).reshape(tok, c2)   # [x3|x4]

    # One-pass LayerNorm statistics over the virtual 4C channel axis (f32).
    inv_c4 = 1.0 / float(2 * c2)
    s1 = jnp.sum(xa, axis=-1, keepdims=True) + jnp.sum(xb, axis=-1, keepdims=True)
    s2 = (jnp.sum(xa * xa, axis=-1, keepdims=True) +
          jnp.sum(xb * xb, axis=-1, keepdims=True))
    mean = s1 * inv_c4
    var = jnp.maximum(s2 * inv_c4 - mean * mean, 0.0)
    rstd = jax.lax.rsqrt(var + eps)

    # Fused normalize + affine (no reused (x - mean) full-tile temporaries).
    na = ((xa - mean) * rstd) * ga_ref[...].astype(jnp.float32) \
        + ba_ref[...].astype(jnp.float32)
    nb = ((xb - mean) * rstd) * gb_ref[...].astype(jnp.float32) \
        + bb_ref[...].astype(jnp.float32)

    # Linear 4C -> 2C as two K=2C MXU matmuls with f32 accumulation.
    acc = jnp.dot(na.astype(mxu_dtype), wa_ref[...].astype(mxu_dtype),
                  preferred_element_type=jnp.float32)
    acc = acc + jnp.dot(nb.astype(mxu_dtype), wb_ref[...].astype(mxu_dtype),
                        preferred_element_type=jnp.float32)
    acc = acc + bias_ref[...].astype(jnp.float32)

    # Direct lane-dense store; no reshape / masked sublane tail in the kernel.
    o_ref[...] = acc.astype(o_ref.dtype)


def patch_merge2(x, gamma, beta, w, bias, *, eps=1e-5, rows_per_block=None):
    """Pallas implementation of PatchMerge2.forward.

    x: (B, H, W, C) channels-last.
    gamma, beta: (4C,) LayerNorm affine params.
    w: (4C, 2C) linear weight (already transposed from PyTorch's (2C, 4C)).
    bias: (2C,) linear bias.
    Returns: (B, ceil(H/2), ceil(W/2), 2C)
    """
    B, H, W, C = x.shape

    # Pad H/W to even (only touches HBM when a size is odd).
    pad_h, pad_w = H % 2, W % 2
    if pad_h or pad_w:
        x = jnp.pad(x, ((0, 0), (0, pad_h), (0, pad_w), (0, 0)))
    Hp, Wp = H + pad_h, W + pad_w
    Ho, Wo = Hp // 2, Wp // 2

    C2 = 2 * C       # width of each row-parity half of the 4C concat
    Cout = 2 * C     # reduction output width
    R = B * Ho       # number of output "double rows"

    # Free, layout-preserving view (no HBM copy): row r = (b, ho); dim1 = h
    # parity; last dim packs two adjacent pixels -> [x1|x2] / [x3|x4].
    xr = x.reshape(R, 2, Wo, C2)

    # Split the params to match the two halves (tiny one-time copies).
    ga = gamma[:C2].reshape(1, C2)
    gb = gamma[C2:].reshape(1, C2)
    ba = beta[:C2].reshape(1, C2)
    bb = beta[C2:].reshape(1, C2)
    wa = w[:C2, :]
    wb = w[C2:, :]
    bias2 = bias.reshape(1, Cout)

    # ---- per-generation VMEM budgets --------------------------------------
    try:
        phys_vmem = int(pltpu.get_tpu_info().vmem_capacity_bytes)
    except Exception:
        phys_vmem = 64 << 20                       # conservative (v7x) fallback
    if phys_vmem >= (100 << 20):                   # v5e / v6e: 128 MiB physical
        target_in_bytes = 8 << 20
        work_budget = 56 << 20
        limit_cap = 96 << 20
    else:                                          # v7x: 64 MiB per TensorCore
        target_in_bytes = 4 << 20
        work_budget = 26 << 20
        limit_cap = 44 << 20

    x_item = jnp.dtype(x.dtype).itemsize
    w_item = jnp.dtype(w.dtype).itemsize
    bytes_per_row = 2 * Wo * C2 * x_item

    # Keep the flattened output block (tile_r*Wo rows) sublane(8)-aligned
    # unless a single block covers the whole array.
    step = 8 // math.gcd(Wo, 8)

    if rows_per_block is not None:
        tile_r = max(1, min(int(rows_per_block), R))
    else:
        # ~4-8 MiB of input per grid step (bandwidth-bound regime).
        tile_r = max(1, target_in_bytes // bytes_per_row)
        # v7x megacore: keep >= ~4 grid steps so both TensorCores get work.
        tile_r = min(tile_r, max(1, -(-R // 4)))
    if tile_r < R:
        tile_r = max(step, (tile_r // step) * step)
    tile_r = min(tile_r, R)

    def vmem_est(tr):
        tok = tr * Wo
        in_blk = tr * 2 * Wo * C2 * x_item
        out_blk = tok * Cout * x_item
        params = 2 * C2 * Cout * w_item + 5 * max(C2, Cout) * 4
        # xa, xb, na, nb, acc + spill slack: count ~7 live f32 full-tile temps.
        interm = 7 * tok * max(C2, Cout) * 4
        return 2 * (in_blk + out_blk) + 2 * params + interm

    while tile_r > step and vmem_est(tile_r) > work_budget:
        tile_r = max(step, ((tile_r // 2) // step) * step)

    vmem_limit = int(min(max(vmem_est(tile_r) + (8 << 20), 32 << 20), limit_cap))

    mxu_dtype = jnp.bfloat16 if jnp.dtype(w.dtype) == jnp.bfloat16 else jnp.float32
    kernel = functools.partial(_merge_kernel, eps=eps, mxu_dtype=mxu_dtype)

    # No row padding: ragged last block relies on masked OOB stores (safe:
    # every output row depends only on its own input row).
    grid = (pl.cdiv(R, tile_r),)

    # TODO(synk): for very large C on v7x, single-buffer the constant-index
    # weight blocks (pipeline_mode=pl.Buffered(1)) / use bf16 weights to free
    # ~half the weight VMEM; unnecessary at these sizes.
    out2d = pl.pallas_call(
        kernel,
        out_shape=jax.ShapeDtypeStruct((R * Wo, Cout), x.dtype),
        grid_spec=pltpu.PrefetchScalarGridSpec(
            num_scalar_prefetch=0,
            grid=grid,
            in_specs=[
                pl.BlockSpec((tile_r, 2, Wo, C2), lambda i: (i, 0, 0, 0)),  # fused 2x2 view
                pl.BlockSpec((1, C2), lambda i: (0, 0)),     # gamma[:2C]
                pl.BlockSpec((1, C2), lambda i: (0, 0)),     # gamma[2C:]
                pl.BlockSpec((1, C2), lambda i: (0, 0)),     # beta[:2C]
                pl.BlockSpec((1, C2), lambda i: (0, 0)),     # beta[2C:]
                pl.BlockSpec((C2, Cout), lambda i: (0, 0)),  # w[:2C, :]
                pl.BlockSpec((C2, Cout), lambda i: (0, 0)),  # w[2C:, :]
                pl.BlockSpec((1, Cout), lambda i: (0, 0)),   # bias
            ],
            out_specs=pl.BlockSpec((tile_r * Wo, Cout), lambda i: (i, 0)),
        ),
        compiler_params=pltpu.CompilerParams(
            dimension_semantics=("parallel",),
            vmem_limit_bytes=vmem_limit,
        ),
    )(xr, ga, gb, ba, bb, wa, wb, bias2)

    # Free reshape in HBM (row-major layout unchanged).
    return out2d.reshape(B, Ho, Wo, Cout)


def patch_merge2_ref(x, gamma, beta, w, bias, eps=1e-5):
    """Pure-JAX reference (mirrors the PyTorch forward)."""
    B, H, W, C = x.shape
    x = jnp.pad(x, ((0, 0), (0, H % 2), (0, W % 2), (0, 0)))
    x1 = x[:, 0::2, 0::2, :]
    x2 = x[:, 0::2, 1::2, :]
    x3 = x[:, 1::2, 0::2, :]
    x4 = x[:, 1::2, 1::2, :]
    xc = jnp.concatenate([x1, x2, x3, x4], axis=-1).astype(jnp.float32)
    mean = jnp.mean(xc, axis=-1, keepdims=True)
    var = jnp.mean((xc - mean) ** 2, axis=-1, keepdims=True)
    xn = (xc - mean) * jax.lax.rsqrt(var + eps)
    xn = xn * gamma + beta
    return (xn @ w + bias).astype(x.dtype)


if __name__ == "__main__":
    key = jax.random.PRNGKey(0)
    B, H, W, C = 2, 16, 16, 32  # emb_dim = 32 -> 4C = 128, 2C = 64

    k_x, k_w, k_b, k_g, k_be = jax.random.split(key, 5)
    x = jax.random.normal(k_x, (B, H, W, C), dtype=jnp.float32)
    gamma = 1.0 + 0.1 * jax.random.normal(k_g, (4 * C,), dtype=jnp.float32)
    beta = 0.1 * jax.random.normal(k_be, (4 * C,), dtype=jnp.float32)
    w = 0.02 * jax.random.normal(k_w, (4 * C, 2 * C), dtype=jnp.float32)
    bias = 0.01 * jax.random.normal(k_b, (2 * C,), dtype=jnp.float32)

    ref = patch_merge2_ref(x, gamma, beta, w, bias)

    # 1) Main run (byte-budget tiling; multiple grid steps at this size).
    out = jax.block_until_ready(patch_merge2(x, gamma, beta, w, bias))
    assert out.shape == (B, H // 2, W // 2, 2 * C), out.shape
    assert jnp.allclose(out, ref, atol=2e-4, rtol=2e-4), float(
        jnp.max(jnp.abs(out - ref)))

    # 2) Ragged-grid run (tile does not divide the row count -> masked tail).
    out2 = jax.block_until_ready(
        patch_merge2(x, gamma, beta, w, bias, rows_per_block=3))
    assert jnp.allclose(out2, ref, atol=2e-4, rtol=2e-4), float(
        jnp.max(jnp.abs(out2 - ref)))

    # 3) Odd-H input (exercises the pad-to-even path).
    x3 = x[:, :15]
    ref3 = patch_merge2_ref(x3, gamma, beta, w, bias)
    out3 = jax.block_until_ready(patch_merge2(x3, gamma, beta, w, bias))
    assert out3.shape == ref3.shape, (out3.shape, ref3.shape)
    assert jnp.allclose(out3, ref3, atol=2e-4, rtol=2e-4), float(
        jnp.max(jnp.abs(out3 - ref3)))

    # 4) bf16 I/O path (bf16 x / w / bias; f32 LN stats + f32 MXU accumulation).
    xb16 = x.astype(jnp.bfloat16)
    wb16 = w.astype(jnp.bfloat16)
    biasb16 = bias.astype(jnp.bfloat16)
    refb = patch_merge2_ref(xb16.astype(jnp.float32), gamma, beta,
                            wb16.astype(jnp.float32), biasb16.astype(jnp.float32))
    outb = jax.block_until_ready(patch_merge2(xb16, gamma, beta, wb16, biasb16))
    assert outb.dtype == jnp.bfloat16
    assert jnp.allclose(outb.astype(jnp.float32), refb, atol=2e-2, rtol=2e-2), float(
        jnp.max(jnp.abs(outb.astype(jnp.float32) - refb)))

    print("KERNEL_OK")
</pallas_src>

<mosaic_0001>
module attributes {stable_mosaic.version = 11 : i64} {
  func.func @_merge_kernel(%arg0: i32, %arg1: memref<4x2x8x64xf32, #tpu.memory_space<vmem>>, %arg2: memref<1x64xf32, #tpu.memory_space<vmem>>, %arg3: memref<1x64xf32, #tpu.memory_space<vmem>>, %arg4: memref<1x64xf32, #tpu.memory_space<vmem>>, %arg5: memref<1x64xf32, #tpu.memory_space<vmem>>, %arg6: memref<64x64xf32, #tpu.memory_space<vmem>>, %arg7: memref<64x64xf32, #tpu.memory_space<vmem>>, %arg8: memref<1x64xf32, #tpu.memory_space<vmem>>, %arg9: memref<32x64xf32, #tpu.memory_space<vmem>>) attributes {dimension_semantics = [#tpu.dimension_semantics<parallel>], iteration_bounds = array<i64: 4>, scalar_prefetch = 0 : i64, scratch_operands = 0 : i64, tpu.core_type = #tpu.core_type<tc>, window_params = [{transform_indices = @transform_0, window_bounds = array<i64: 4, 2, 8, 64>}, {pipeline_mode = #tpu.pipeline_mode<synchronous>, transform_indices = @transform_1, window_bounds = array<i64: 1, 64>}, {pipeline_mode = #tpu.pipeline_mode<synchronous>, transform_indices = @transform_2, window_bounds = array<i64: 1, 64>}, {pipeline_mode = #tpu.pipeline_mode<synchronous>, transform_indices = @transform_3, window_bounds = array<i64: 1, 64>}, {pipeline_mode = #tpu.pipeline_mode<synchronous>, transform_indices = @transform_4, window_bounds = array<i64: 1, 64>}, {pipeline_mode = #tpu.pipeline_mode<synchronous>, transform_indices = @transform_5, window_bounds = array<i64: 64, 64>}, {pipeline_mode = #tpu.pipeline_mode<synchronous>, transform_indices = @transform_6, window_bounds = array<i64: 64, 64>}, {pipeline_mode = #tpu.pipeline_mode<synchronous>, transform_indices = @transform_7, window_bounds = array<i64: 1, 64>}, {transform_indices = @transform_8, window_bounds = array<i64: 32, 64>}]} {
    %c0 = arith.constant 0 : index
    %c0_0 = arith.constant 0 : index
    %c0_1 = arith.constant 0 : index
    %c0_2 = arith.constant 0 : index
    %0 = vector.load %arg1[%c0, %c0_0, %c0_1, %c0_2] : memref<4x2x8x64xf32, #tpu.memory_space<vmem>>, vector<4x2x8x64xf32>
    %1 = vector.extract_strided_slice %0 {offsets = [0, 0, 0, 0], sizes = [4, 1, 8, 64], strides = [1, 1, 1, 1]} : vector<4x2x8x64xf32> to vector<4x1x8x64xf32>
    %2 = vector.shape_cast %1 : vector<4x1x8x64xf32> to vector<4x8x64xf32>
    %3 = vector.shape_cast %2 : vector<4x8x64xf32> to vector<32x64xf32>
    %4 = vector.extract_strided_slice %0 {offsets = [0, 1, 0, 0], sizes = [4, 1, 8, 64], strides = [1, 1, 1, 1]} : vector<4x2x8x64xf32> to vector<4x1x8x64xf32>
    %5 = vector.shape_cast %4 : vector<4x1x8x64xf32> to vector<4x8x64xf32>
    %6 = vector.shape_cast %5 : vector<4x8x64xf32> to vector<32x64xf32>
    %cst = arith.constant dense<0.000000e+00> : vector<32xf32>
    %7 = vector.multi_reduction <add>, %3, %cst [1] : vector<32x64xf32> to vector<32xf32>
    %8 = vector.shape_cast %7 : vector<32xf32> to vector<32x1xf32>
    %cst_3 = arith.constant dense<0.000000e+00> : vector<32xf32>
    %9 = vector.multi_reduction <add>, %6, %cst_3 [1] : vector<32x64xf32> to vector<32xf32>
    %10 = vector.shape_cast %9 : vector<32xf32> to vector<32x1xf32>
    %11 = arith.addf %8, %10 : vector<32x1xf32>
    %12 = arith.mulf %3, %3 : vector<32x64xf32>
    %cst_4 = arith.constant dense<0.000000e+00> : vector<32xf32>
    %13 = vector.multi_reduction <add>, %12, %cst_4 [1] : vector<32x64xf32> to vector<32xf32>
    %14 = vector.shape_cast %13 : vector<32xf32> to vector<32x1xf32>
    %15 = arith.mulf %6, %6 : vector<32x64xf32>
    %cst_5 = arith.constant dense<0.000000e+00> : vector<32xf32>
    %16 = vector.multi_reduction <add>, %15, %cst_5 [1] : vector<32x64xf32> to vector<32xf32>
    %17 = vector.shape_cast %16 : vector<32xf32> to vector<32x1xf32>
    %18 = arith.addf %14, %17 : vector<32x1xf32>
    %cst_6 = arith.constant 7.812500e-03 : f32
    %19 = vector.broadcast %cst_6 : f32 to vector<32x1xf32>
    %20 = arith.mulf %11, %19 : vector<32x1xf32>
    %cst_7 = arith.constant 7.812500e-03 : f32
    %21 = vector.broadcast %cst_7 : f32 to vector<32x1xf32>
    %22 = arith.mulf %18, %21 : vector<32x1xf32>
    %23 = arith.mulf %20, %20 : vector<32x1xf32>
    %24 = arith.subf %22, %23 : vector<32x1xf32>
    %cst_8 = arith.constant 0.000000e+00 : f32
    %25 = vector.broadcast %cst_8 : f32 to vector<32x1xf32>
    %26 = arith.maximumf %24, %25 : vector<32x1xf32>
    %cst_9 = arith.constant 9.99999974E-6 : f32
    %27 = vector.broadcast %cst_9 : f32 to vector<32x1xf32>
    %28 = arith.addf %26, %27 : vector<32x1xf32>
    %29 = math.rsqrt %28 : vector<32x1xf32>
    %30 = vector.broadcast %20 : vector<32x1xf32> to vector<32x64xf32>
    %31 = arith.subf %3, %30 : vector<32x64xf32>
    %32 = vector.broadcast %29 : vector<32x1xf32> to vector<32x64xf32>
    %33 = arith.mulf %31, %32 : vector<32x64xf32>
    %c0_10 = arith.constant 0 : index
    %c0_11 = arith.constant 0 : index
    %34 = vector.load %arg2[%c0_10, %c0_11] : memref<1x64xf32, #tpu.memory_space<vmem>>, vector<1x64xf32>
    %35 = vector.broadcast %34 : vector<1x64xf32> to vector<32x64xf32>
    %36 = arith.mulf %33, %35 : vector<32x64xf32>
    %c0_12 = arith.constant 0 : index
    %c0_13 = arith.constant 0 : index
    %37 = vector.load %arg4[%c0_12, %c0_13] : memref<1x64xf32, #tpu.memory_space<vmem>>, vector<1x64xf32>
    %38 = vector.broadcast %37 : vector<1x64xf32> to vector<32x64xf32>
    %39 = arith.addf %36, %38 : vector<32x64xf32>
    %40 = vector.broadcast %20 : vector<32x1xf32> to vector<32x64xf32>
    %41 = arith.subf %6, %40 : vector<32x64xf32>
    %42 = vector.broadcast %29 : vector<32x1xf32> to vector<32x64xf32>
    %43 = arith.mulf %41, %42 : vector<32x64xf32>
    %c0_14 = arith.constant 0 : index
    %c0_15 = arith.constant 0 : index
    %44 = vector.load %arg3[%c0_14, %c0_15] : memref<1x64xf32, #tpu.memory_space<vmem>>, vector<1x64xf32>
    %45 = vector.broadcast %44 : vector<1x64xf32> to vector<32x64xf32>
    %46 = arith.mulf %43, %45 : vector<32x64xf32>
    %c0_16 = arith.constant 0 : index
    %c0_17 = arith.constant 0 : index
    %47 = vector.load %arg5[%c0_16, %c0_17] : memref<1x64xf32, #tpu.memory_space<vmem>>, vector<1x64xf32>
    %48 = vector.broadcast %47 : vector<1x64xf32> to vector<32x64xf32>
    %49 = arith.addf %46, %48 : vector<32x64xf32>
    %c0_18 = arith.constant 0 : index
    %c0_19 = arith.constant 0 : index
    %50 = vector.load %arg6[%c0_18, %c0_19] : memref<64x64xf32, #tpu.memory_space<vmem>>, vector<64x64xf32>
    %cst_20 = arith.constant dense<0.000000e+00> : vector<32x64xf32>
    %51 = tpu.matmul %39, %50, %cst_20 {dimension_numbers = #tpu.dot_dimension_numbers<[1], [0], [0], [1], [0, 0, 1, 1], [], []>} : vector<32x64xf32>, vector<64x64xf32>, vector<32x64xf32> -> vector<32x64xf32>
    %c0_21 = arith.constant 0 : index
    %c0_22 = arith.constant 0 : index
    %52 = vector.load %arg7[%c0_21, %c0_22] : memref<64x64xf32, #tpu.memory_space<vmem>>, vector<64x64xf32>
    %cst_23 = arith.constant dense<0.000000e+00> : vector<32x64xf32>
    %53 = tpu.matmul %49, %52, %cst_23 {dimension_numbers = #tpu.dot_dimension_numbers<[1], [0], [0], [1], [0, 0, 1, 1], [], []>} : vector<32x64xf32>, vector<64x64xf32>, vector<32x64xf32> -> vector<32x64xf32>
    %54 = arith.addf %51, %53 : vector<32x64xf32>
    %c0_24 = arith.constant 0 : index
    %c0_25 = arith.constant 0 : index
    %55 = vector.load %arg8[%c0_24, %c0_25] : memref<1x64xf32, #tpu.memory_space<vmem>>, vector<1x64xf32>
    %56 = vector.broadcast %55 : vector<1x64xf32> to vector<32x64xf32>
    %57 = arith.addf %54, %56 : vector<32x64xf32>
    %c0_26 = arith.constant 0 : index
    %c0_27 = arith.constant 0 : index
    %58 = vector.load %arg9[%c0_26, %c0_27] : memref<32x64xf32, #tpu.memory_space<vmem>>, vector<32x64xf32>
    tpu.vector_store %arg9[%c0_26, %c0_27], %57 {strides = array<i32>} : memref<32x64xf32, #tpu.memory_space<vmem>>, vector<32x64xf32>,
    return
  }
  func.func @transform_0(%arg0: i32) -> (i32, i32, i32, i32) {
    %c0_i32 = arith.constant 0 : i32
    %c0_i32_0 = arith.constant 0 : i32
    %c0_i32_1 = arith.constant 0 : i32
    %c0_i32_2 = arith.constant 0 : i32
    return %arg0, %c0_i32, %c0_i32_0, %c0_i32_1 : i32, i32, i32, i32
  }
  func.func @transform_1(%arg0: i32) -> (i32, i32) {
    %c0_i32 = arith.constant 0 : i32
    %c0_i32_0 = arith.constant 0 : i32
    %c0_i32_1 = arith.constant 0 : i32
    return %c0_i32, %c0_i32_0 : i32, i32
  }
  func.func @transform_2(%arg0: i32) -> (i32, i32) {
    %c0_i32 = arith.constant 0 : i32
    %c0_i32_0 = arith.constant 0 : i32
    %c0_i32_1 = arith.constant 0 : i32
    return %c0_i32, %c0_i32_0 : i32, i32
  }
  func.func @transform_3(%arg0: i32) -> (i32, i32) {
    %c0_i32 = arith.constant 0 : i32
    %c0_i32_0 = arith.constant 0 : i32
    %c0_i32_1 = arith.constant 0 : i32
    return %c0_i32, %c0_i32_0 : i32, i32
  }
  func.func @transform_4(%arg0: i32) -> (i32, i32) {
    %c0_i32 = arith.constant 0 : i32
    %c0_i32_0 = arith.constant 0 : i32
    %c0_i32_1 = arith.constant 0 : i32
    return %c0_i32, %c0_i32_0 : i32, i32
  }
  func.func @transform_5(%arg0: i32) -> (i32, i32) {
    %c0_i32 = arith.constant 0 : i32
    %c0_i32_0 = arith.constant 0 : i32
    %c0_i32_1 = arith.constant 0 : i32
    return %c0_i32, %c0_i32_0 : i32, i32
  }
  func.func @transform_6(%arg0: i32) -> (i32, i32) {
    %c0_i32 = arith.constant 0 : i32
    %c0_i32_0 = arith.constant 0 : i32
    %c0_i32_1 = arith.constant 0 : i32
    return %c0_i32, %c0_i32_0 : i32, i32
  }
  func.func @transform_7(%arg0: i32) -> (i32, i32) {
    %c0_i32 = arith.constant 0 : i32
    %c0_i32_0 = arith.constant 0 : i32
    %c0_i32_1 = arith.constant 0 : i32
    return %c0_i32, %c0_i32_0 : i32, i32
  }
  func.func @transform_8(%arg0: i32) -> (i32, i32) {
    %c0_i32 = arith.constant 0 : i32
    %c0_i32_0 = arith.constant 0 : i32
    return %arg0, %c0_i32 : i32, i32
  }
}

</mosaic_0001>

<bundles_post_ra>
// kernel: tpu_custom_call.1
= control target key start
LH: loop header
LB: loop body
LE: loop exit
PB: predicated region body
PF: predicated region fallthrough
CT: control target
= control target key end

     0   :  { %13 = vsyncpa [#allocation3], 0  ;;  %s1501_s0 = inlined_call_operand.hbm [shape: f32[16,2,8,64], index: 0, kind: input, shape index: {}]   ;;  %s1502_s1 = inlined_call_operand.vmem [shape: f32[1,64], index: 1, kind: input, shape index: {}]   ;;  %s1503_s2 = inlined_call_operand.vmem [shape: f32[1,64], index: 2, kind: input, shape index: {}]   ;;  %s1504_s3 = inlined_call_operand.vmem [shape: f32[1,64], index: 3, kind: input, shape index: {}]   ;;  %s1505_s4 = inlined_call_operand.vmem [shape: f32[1,64], index: 4, kind: input, shape index: {}]   ;;  %s1506_s5 = inlined_call_operand.hbm [shape: f32[64,64], index: 5, kind: input, shape index: {}]   ;;  %s1507_s6 = inlined_call_operand.hbm [shape: f32[64,64], index: 6, kind: input, shape index: {}]   ;;  %s1508_s7 = inlined_call_operand.vmem [shape: f32[1,64], index: 7, kind: input, shape index: {}]   ;;  %s1509_s8 = inlined_call_operand.vmem [shape: f32[128,64], index: 8, kind: output, shape index: {}]  }
   0x1   :  { %15 = vsyncpa [#allocation3 + $0x1], 0 }
   0x2   :  { %16 = vsyncpa [#allocation5], 0  ;;  %s1213_s27 = smov 0   ;;  %s1215_s28 = smov 0  }
   0x3   :  { %s1217_s29 = smov 0   ;;  %s1219_s30 = smov 0  }
   0x4 LB: > { %s830_s9 = sadd.s32 4294967295, %s1161_s30   ;;  %p42_p0 = scmp.ne.s32.totalorder %s1153_s28, %s1149_s27  ;;  %s1161_s30 = sphi %s1219_s30, %s1525_s30   ;;  %s1157_s29 = sphi %s1217_s29, %s1524_s29   ;;  %s1153_s28 = sphi %s1215_s28, %s1523_s28   ;;  %s1149_s27 = sphi %s1213_s27, %s1522_s27  }
   0x5   : > { %p1235_p1 = scmp.eq.s32.totalorder %s830_s9, 0  ;;  %p832_p2 = scmp.ge.s32.totalorder %s1161_s30, 1 }
   0x6   : > { %p226_p3 = scmp.lt.s32.totalorder %s1161_s30, 5  ;;  %s1163_s13 = smov [#allocation4]  }
   0x7   : > { %s1514_s10 = scalar_select %p1235_p1, 1, 0 }
   0x8   : > { %p1243_p4 = por %p1235_p1, %p42_p0  ;;  %p1247_p5 = pnand %p832_p2, %p226_p3 }
   0x9   : > { %s250_s14 = sshll.u32 %s1163_s13, 4  ;;  %s1164_s16 = smov [#allocation6]   ;;  %s251_s14 = int_to_ptr.vmem [resolvable:$true] %s250_s14 }
   0xa   : > { %s1515_s11 = scalar_select %p1243_p4, 1, 0 }
   0xb   : > { %s1516_s12 = scalar_select %p1247_p5, 1, 0 }
   0xc   : > { %p977_p6 = pneg %p1247_p5  ;;  %s263_s17 = sshll.u32 %s1164_s16, 4  ;;  %s1259_s17 = int_to_ptr.vmem [resolvable:$true] %s263_s17 }
   0xd   : > { %s1037_s20 = scalar_lea.hbm %s1506_s5, 1024 }
   0xe   : > { %p1255_p7 = pnand %p977_p6, %p1235_p1  ;;  %p1038_p8 = scmp.ne.s32.totalorder %s1506_s5, %s1037_s20 }
   0xf   : > { %p1044_p12 = scmp.lt.u32.totalorder %s1037_s20, %s1506_s5 }
  0x10   : > { %p1039_p9 = pneg %p1255_p7 }
  0x12   : > { %p1040_p10 = pnand %p1039_p9, %p1038_p8 }
  0x14   : > { %p1041_p11 = pneg %p1040_p10 }
  0x16   : > { %p1046_p13 = pnand %p1044_p12, %p1041_p11 }
  0x18   : > { %1049 = shalt.err (!%p1046_p13)
}
  0x19   : > { %s1050_s25 = scalar_lea.vmem %s251_s14, 1024  ;;  %p1058_p6 = scmp.lt.s32.totalorder %s251_s14, %s251_s14 }
  0x1a   : > { %p1051_p0 = scmp.ne.s32.totalorder %s251_s14, %s1050_s25  ;;  %p1059_p1 = scmp.lt.s32.totalorder %s1050_s25, %s1050_s25 }
  0x1c   : > { %p1053_p2 = pnand %p1051_p0, %p1039_p9  ;;  %p1060_p4 = por %p1059_p1, %p1058_p6 }
  0x1e   : > { %p1054_p3 = pneg %p1053_p2 }
  0x20   : > { %p1061_p5 = pnand %p1060_p4, %p1054_p3 }
  0x22   : > { %1064 = shalt.err (!%p1061_p5)
}
  0x23   : > { %s1165_s26 = smov 128   ;;  %s1166_s27 = smov 8  }
  0x24   : > { %980 = dma.hbm_to_vmem [thread:$0]  (!%p1255_p7), %s1506_s5, 1024, %s251_s14, [#allocation5], %s1165_s26, %s1165_s26, %s1166_s27  }
  0x25   : > { %s1065_s20 = scalar_lea.hbm %s1507_s6, 1024 }
  0x26   : > { %p1066_p1 = scmp.ne.s32.totalorder %s1507_s6, %s1065_s20  ;;  %p1072_p8 = scmp.lt.u32.totalorder %s1065_s20, %s1507_s6 }
  0x28   : > { %p1068_p4 = pnand %p1066_p1, %p1039_p9 }
  0x2a   : > { %p1069_p5 = pneg %p1068_p4 }
  0x2c   : > { %p1074_p10 = pnand %p1072_p8, %p1069_p5 }
  0x2e   : > { %1077 = shalt.err (!%p1074_p10)
}
  0x2f   : > { %s1078_s14 = scalar_lea.vmem %s1259_s17, 1024  ;;  %p1086_p0 = scmp.lt.s32.totalorder %s1259_s17, %s1259_s17 }
  0x30   : > { %p1079_p11 = scmp.ne.s32.totalorder %s1259_s17, %s1078_s14  ;;  %p1087_p2 = scmp.lt.s32.totalorder %s1078_s14, %s1078_s14 }
  0x32   : > { %p1081_p12 = pnand %p1079_p11, %p1039_p9  ;;  %p1088_p3 = por %p1087_p2, %p1086_p0 }
  0x34   : > { %p1082_p13 = pneg %p1081_p12 }
  0x36   : > { %p1089_p6 = pnand %p1088_p3, %p1082_p13 }
  0x38   : > { %1092 = shalt.err (!%p1089_p6)
}
  0x39   : > { %983 = dma.hbm_to_vmem [thread:$0]  (!%p1255_p7), %s1507_s6, 1024, %s1259_s17, [#allocation5], %s1165_s26, %s1165_s26, %s1166_s27  }
  0x3a   : > { %s1315_s16 = sadd.s32 1, %s1161_s30   ;;  %s29_s15 = sadd.s32 1, %s1157_s29 }
  0x3b   : > { %s26_s18 = ssub.s32 %s1161_s30, %s1315_s16  ;;  %p36_p9 = scmp.ne.s32.totalorder %s1157_s29, %s1153_s28 }
  0x3c   : > { %p27_p1 = scmp.eq.s32.totalorder %s26_s18, 0  ;;  %p37_p4 = scmp.eq.s32.totalorder %s1161_s30, 0 }
  0x3d   : > { %p990_p5 = scmp.lt.s32.totalorder %s1161_s30, 4  ;;  %s280_s19 = sand.u32 1, %s1157_s29  }
  0x3e   : > { %s1326_s20 = scalar_select %p27_p1, %s1157_s29, %s29_s15  }
  0x3f   : > { %p38_p8 = por %p37_p4, %p36_p9  ;;  %s836_s21 = sshll.u32 %s280_s19, 6 }
  0x40   : > { %s862_s22 = sshll.u32 %s1161_s30, 10  ;;  %s284_s17 = scalar_lea.vmem [#allocation2], %s836_s21 }
  0x41   : > { %s1332_s14 = scalar_lea.hbm %s1501_s0, %s862_s22  ;;  %s292_s25 = sshll.u32 %s284_s17, 4  ;;  %s1338_s25 = int_to_ptr.vmem [resolvable:$true] %s292_s25 }
  0x42   : > { %p1334_p7 = pnand %p990_p5, %p38_p8  ;;  %s1340_s15 = scalar_lea.sflag [#allocation3], %s280_s19 }
  0x43   : > { %s1093_s18 = scalar_lea.hbm %s1332_s14, 1024  ;;  %s1098_s23 = scalar_lea.hbm %s1501_s0, 4096 }
  0x44   : > { %p1094_p10 = scmp.ne.s32.totalorder %s1332_s14, %s1093_s18  ;;  %p1095_p11 = pneg %p1334_p7 }
  0x45   : > { %p1099_p0 = scmp.lt.u32.totalorder %s1332_s14, %s1501_s0  ;;  %p1100_p2 = scmp.lt.u32.totalorder %s1098_s23, %s1093_s18 }
  0x46   : > { %p1096_p12 = pnand %p1095_p11, %p1094_p10  ;;  %p1102_p6 = scmp.lt.u32.totalorder %s1093_s18, %s1332_s14 }
  0x47   : > { %p1101_p3 = por %p1100_p2, %p1099_p0 }
  0x48   : > { %p1097_p13 = pneg %p1096_p12 }
  0x49   : > { %p1103_p9 = por %p1102_p6, %p1101_p3 }
  0x4b   : > { %p1104_p1 = pnand %p1103_p9, %p1097_p13 }
  0x4d   : > { %1107 = shalt.err (!%p1104_p1)
}
  0x4e   : > { %s1108_s19 = scalar_lea.vmem %s1338_s25, 1024  ;;  %s1167_s21 = smov [#allocation2]  }
  0x4f   : > { %p1109_p4 = scmp.ne.s32.totalorder %s1338_s25, %s1108_s19  ;;  %s1113_s22 = sshll.u32 %s1167_s21, 4  ;;  %s1114_s22 = int_to_ptr.vmem [resolvable:$false] %s1113_s22 }
  0x50   : > { %s1115_s24 = scalar_lea.vmem %s1114_s22, 2048  ;;  %p1116_p10 = scmp.lt.s32.totalorder %s1338_s25, %s1114_s22 }
  0x51   : > { %p1111_p5 = pnand %p1109_p4, %p1095_p11  ;;  %p1117_p12 = scmp.lt.s32.totalorder %s1115_s24, %s1108_s19 }
  0x53   : > { %p1112_p8 = pneg %p1111_p5  ;;  %p1118_p0 = por %p1117_p12, %p1116_p10 }
  0x55   : > { %p1119_p2 = pnand %p1118_p0, %p1112_p8 }
  0x57   : > { %1122 = shalt.err (!%p1119_p2)
}
  0x58   : > { %987 = dma.hbm_to_vmem [thread:$0]  (!%p1334_p7), %s1332_s14, 1024, %s1338_s25, %s1340_s15, %s1165_s26, %s1165_s26, %s1166_s27  }
  0x59   : > { %p1519_p11 = scmp.ne.s32.totalorder %s1516_s12, 0 }
  0x5a   : > { %s306_s18 = sand.u32 (!%p1519_p11), 1, %s1153_s28   ;;  %p1520_p13 = scmp.ne.s32.totalorder (!%p1519_p11), %s1515_s11, 0 }
  0x5b   : > { %304 = sbr.rel (%p1519_p11) target bundleno = 519 (0x207), region = 52  ;;  %s841_s23 = sshll.u32 (!%p1519_p11), %s306_s18, 6 }
  0x5c   : > { %s307_s17 = scalar_lea.sflag (!%p1519_p11), [#allocation3], %s306_s18  ;;  %s1374_s19 = scalar_lea.vmem (!%p1519_p11), [#allocation2], %s841_s23 }
  0x62   : > { %1140 = dma.done.wait (%p1520_p13), %s307_s17, 1024  }
  0x63   : > { %1142 = vsyncadd (%p1520_p13), %s307_s17, 4294966272  ;;  %p1521_p3 = scmp.ne.s32.totalorder %s1514_s10, 0 }
  0x65   : > { %1144 = dma.done.wait (%p1521_p3), [#allocation5], 2048  }
  0x66   : > { %1146 = vsyncadd (%p1521_p3), [#allocation5], 4294965248  ;;  %vm366_vm0 = vcmask 523264   ;;  %v1385_v0 = vld [vmem:[%s1374_s19 + $0x10] sm:$0xff]  ;;  %v1388_v1 = vld [vmem:[%s1374_s19] sm:$0xff]  ;;  %s844_s15 = sshll.u32 %s830_s9, 2 }
  0x67   : > { %v1391_v2 = vld [vmem:[%s1374_s19 + $0x18] sm:$0xff]  ;;  %v370_v3 = vsel %vm366_vm0, %v1385_v0, 0.0  ;;  %v367_v4 = vsel %vm366_vm0, %v1388_v1, 0.0  ;;  %v1398_v5 = vld [vmem:[%s1374_s19 + $0x8] sm:$0xff]  ;;  %v395_v9 = vmul.f32 %v1388_v1, %v1388_v1  ;;  %v396_v13 = vmul.f32 %v1385_v0, %v1385_v0  ;;  %v1420_v17 = vld [vmem:[%s1374_s19 + $0x20] sm:$0xff]  ;;  %p353_p7 = scmp.lt.s32.totalorder %s844_s15, 15 }
  0x68   : > { %371 = vadd.xlane.f32.xlu1 %v370_v3  ;;  %368 = vadd.xlane.f32.xlu0 %v367_v4  ;;  %v382_v6 = vsel %vm366_vm0, %v1391_v2, 0.0  ;;  %v379_v7 = vsel %vm366_vm0, %v1398_v5, 0.0  ;;  %v411_v8 = vmul.f32 %v1398_v5, %v1398_v5  ;;  %v412_v12 = vmul.f32 %v1391_v2, %v1391_v2  ;;  %v1417_v16 = vld [vmem:[%s1374_s19 + $0x28] sm:$0xff]  ;;  %v1427_v20 = vld [vmem:[%s1374_s19 + $0x38] sm:$0xff]  ;;  %v1430_v21 = vld [vmem:[%s1374_s19 + $0x30] sm:$0xff] }
  0x69   : > { %v399_v11 = vsel %vm366_vm0, %v395_v9, 0.0  ;;  %v402_v15 = vsel %vm366_vm0, %v396_v13, 0.0  ;;  %v385_v18 = vsel %vm366_vm0, %v1417_v16, 0.0  ;;  %v373_v19 = vsel %vm366_vm0, %v1420_v17, 0.0  ;;  %v527_v32 = vld [vmem:[#allocation6] sm:$0xff]  ;;  %v528_v33 = vld [vmem:[#allocation6 + $0x8] sm:$0xff] }
  0x6a   : > { %v415_v10 = vsel %vm366_vm0, %v411_v8, 0.0  ;;  %v418_v14 = vsel %vm366_vm0, %v412_v12, 0.0  ;;  %v388_v22 = vsel %vm366_vm0, %v1427_v20, 0.0  ;;  %v376_v23 = vsel %vm366_vm0, %v1430_v21, 0.0  ;;  %v519_v34 = vld [vmem:[#allocation4] sm:$0xff]  ;;  %v520_v36 = vld [vmem:[#allocation4 + $0x8] sm:$0xff] }
  0x6b   : > { %v413_v24 = vmul.f32 %v1417_v16, %v1417_v16  ;;  %v397_v25 = vmul.f32 %v1420_v17, %v1420_v17  ;;  %v414_v28 = vmul.f32 %v1427_v20, %v1427_v20  ;;  %v398_v29 = vmul.f32 %v1430_v21, %v1430_v21  ;;  %v529_v38 = vld [vmem:[#allocation6 + $0x10] sm:$0xff]  ;;  %v530_v39 = vld [vmem:[#allocation6 + $0x18] sm:$0xff]  ;;  %v531_v44 = vld [vmem:[#allocation6 + $0x20] sm:$0xff]  ;;  %s1527_s15 = smov (!%p353_p7, %s844_s15), 15 }
  0x6c   : > { %383 = vadd.xlane.f32.xlu1 %v382_v6  ;;  %380 = vadd.xlane.f32.xlu0 %v379_v7  ;;  %v931_v35 = vpack.c.bf16 %v528_v33, %v527_v32  ;;  %v947_v37 = vpack.c.bf16 %v520_v36, %v519_v34  ;;  %v521_v40 = vld [vmem:[#allocation4 + $0x10] sm:$0xff]  ;;  %v935_v41 = vpack.c.bf16 %v530_v39, %v529_v38  ;;  %v522_v42 = vld [vmem:[#allocation4 + $0x18] sm:$0xff]  ;;  %v532_v45 = vld [vmem:[#allocation6 + $0x28] sm:$0xff]  ;;  %s845_s21 = sshll.u32 %s1527_s15, 3 }
  0x6d   : > { %v421_v26 = vsel %vm366_vm0, %v413_v24, 0.0  ;;  %v405_v27 = vsel %vm366_vm0, %v397_v25, 0.0  ;;  %v424_v30 = vsel %vm366_vm0, %v414_v28, 0.0  ;;  %v408_v31 = vsel %vm366_vm0, %v398_v29, 0.0  ;;  %v523_v46 = vld [vmem:[#allocation4 + $0x20] sm:$0xff]  ;;  %v524_v48 = vld [vmem:[#allocation4 + $0x28] sm:$0xff]  ;;  %s356_s17 = scalar_lea.vmem %s1509_s8, %s845_s21 }
  0x6e   : > { %932 = vmatprep.subr.bf16.mxu1 %v931_v35  ;;  %948 = vmatprep.subr.bf16.mxu0 %v947_v37  ;;  %v951_v43 = vpack.c.bf16 %v522_v42, %v521_v40  ;;  %v939_v47 = vpack.c.bf16 %v532_v45, %v531_v44  ;;  %v955_v49 = vpack.c.bf16 %v524_v48, %v523_v46  ;;  %v533_v50 = vld [vmem:[#allocation6 + $0x30] sm:$0xff]  ;;  %v534_v51 = vld [vmem:[#allocation6 + $0x38] sm:$0xff]  ;;  %v848_v45 = vld [vmem:[%s1503_s2] ss:$0 sm:$0xff] }
  0x6f   : > { %934 = vmatpush3.bf16.msra.mxu1 %v931_v35  ;;  %950 = vmatpush3.bf16.msra.mxu0 %v947_v37  ;;  %v943_v52 = vpack.c.bf16 %v534_v51, %v533_v50  ;;  %v525_v53 = vld [vmem:[#allocation4 + $0x30] sm:$0xff]  ;;  %v526_v54 = vld [vmem:[#allocation4 + $0x38] sm:$0xff]  ;;  %v846_v46 = vld [vmem:[%s1502_s1] ss:$0 sm:$0xff] }
  0x70   : > { %416 = vadd.xlane.f32.xlu1 %v415_v10  ;;  %400 = vadd.xlane.f32.xlu0 %v399_v11  ;;  %v959_v55 = vpack.c.bf16 %v526_v54, %v525_v53  ;;  %v849_v51 = vld [vmem:[%s1505_s4] ss:$0 sm:$0xff] }
  0x71   : > { %936 = vmatprep.subr.bf16.mxu1 %v935_v41  ;;  %952 = vmatprep.subr.bf16.mxu0 %v951_v43 }
  0x73   : > { %938 = vmatpush3.bf16.msra.mxu1 %v935_v41  ;;  %954 = vmatpush3.bf16.msra.mxu0 %v951_v43 }
  0x74   : > { %419 = vadd.xlane.f32.xlu1 %v418_v14  ;;  %403 = vadd.xlane.f32.xlu0 %v402_v15 }
  0x75   : > { %940 = vmatprep.subr.bf16.mxu1 %v939_v47  ;;  %956 = vmatprep.subr.bf16.mxu0 %v955_v49 }
  0x77   : > { %942 = vmatpush3.bf16.msra.mxu1 %v939_v47  ;;  %958 = vmatpush3.bf16.msra.mxu0 %v955_v49 }
  0x78   : > { %386 = vadd.xlane.f32.xlu1 %v385_v18  ;;  %374 = vadd.xlane.f32.xlu0 %v373_v19 }
  0x79   : > { %944 = vmatprep.subr.bf16.mxu1 %v943_v52  ;;  %960 = vmatprep.subr.bf16.mxu0 %v959_v55 }
  0x7b   : > { %946 = vmatpush3.bf16.msra.mxu1 %v943_v52  ;;  %962 = vmatpush3.bf16.msra.mxu0 %v959_v55  ;;  %v847_v52 = vld [vmem:[%s1504_s3] ss:$0 sm:$0xff] }
  0x7c   : > { %389 = vadd.xlane.f32.xlu1 %v388_v22  ;;  %377 = vadd.xlane.f32.xlu0 %v376_v23 }
  0x80   : > { %422 = vadd.xlane.f32.xlu1 %v421_v26  ;;  %406 = vadd.xlane.f32.xlu0 %v405_v27 }
  0x84   : > { %425 = vadd.xlane.f32.xlu1 %v424_v30  ;;  %409 = vadd.xlane.f32.xlu0 %v408_v31 }
  0xf5   : > { %v372_v56 = vpop.xlane.xlu1 %371  ;;  %v369_v57 = vpop.xlane.xlu0 %368 }
  0xf9   : > { %v384_v58 = vpop.xlane.xlu1 %383  ;;  %v381_v59 = vpop.xlane.xlu0 %380 }
  0xfa   : > { %v391_v60 = vadd.f32 %v381_v59, %v369_v57  ;;  %v392_v61 = vadd.f32 %v384_v58, %v372_v56 }
  0xfc   : > { %v431_v62 = vmul.f32 0.0078125, %v391_v60  ;;  %v432_v6 = vmul.f32 0.0078125, %v392_v61 }
  0xfd   : > { %v417_v63 = vpop.xlane.xlu1 %416  ;;  %v401_v3 = vpop.xlane.xlu0 %400 }
  0xfe   : > { %v427_v4 = vadd.f32 %v417_v63, %v401_v3  ;;  %v439_v7 = vmul.f32 %v431_v62, %v431_v62  ;;  %v440_v13 = vmul.f32 %v432_v6, %v432_v6  ;;  %v459_v39 = vsub.f32 %v1388_v1, %v431_v62 }
  0xff   : > { %v489_v40 = vsub.f32 %v1398_v5, %v431_v62  ;;  %v460_v1 = vsub.f32 %v1385_v0, %v432_v6  ;;  %v490_v5 = vsub.f32 %v1391_v2, %v432_v6 }
 0x100   : > { %v435_v8 = vmul.f32 0.0078125, %v427_v4 }
 0x101   : > { %v420_v9 = vpop.xlane.xlu1 %419  ;;  %v404_v10 = vpop.xlane.xlu0 %403 }
 0x102   : > { %v428_v11 = vadd.f32 %v420_v9, %v404_v10  ;;  %v443_v12 = vsub.f32 %v435_v8, %v439_v7 }
 0x104   : > { %v436_v14 = vmul.f32 0.0078125, %v428_v11  ;;  %v447_v15 = vmax.f32 %v443_v12, 0.0 }
 0x105   : > { %v387_v18 = vpop.xlane.xlu1 %386  ;;  %v375_v19 = vpop.xlane.xlu0 %374 }
 0x106   : > { %v444_v22 = vsub.f32 %v436_v14, %v440_v13  ;;  %v451_v23 = vadd.f32 1e-05, %v447_v15  ;;  %v393_v25 = vadd.f32 %v387_v18, %v375_v19 }
 0x108   : > { %v448_v24 = vmax.f32 %v444_v22, 0.0  ;;  %1029 = vrsqrt.f32 %v451_v23  ;;  %v433_v30 = vmul.f32 0.0078125, %v393_v25 }
 0x109   : > { %v390_v26 = vpop.xlane.xlu1 %389  ;;  %v378_v27 = vpop.xlane.xlu0 %377 }
 0x10a   : > { %v452_v28 = vadd.f32 1e-05, %v448_v24  ;;  %v394_v29 = vadd.f32 %v390_v26, %v378_v27  ;;  %v441_v35 = vmul.f32 %v433_v30, %v433_v30  ;;  %v461_v6 = vsub.f32 %v1420_v17, %v433_v30  ;;  %v858_v26 = vld [vmem:[%s1508_s7] ss:$0 sm:$0xff] }
 0x10b   : > { %v491_v7 = vsub.f32 %v1417_v16, %v433_v30 }
 0x10c   : > { %1031 = vrsqrt.f32 %v452_v28  ;;  %v434_v34 = vmul.f32 0.0078125, %v394_v29 }
 0x10d   : > { %v423_v31 = vpop.xlane.xlu1 %422  ;;  %v407_v32 = vpop.xlane.xlu0 %406 }
 0x10e   : > { %v429_v33 = vadd.f32 %v423_v31, %v407_v32  ;;  %v442_v44 = vmul.f32 %v434_v34, %v434_v34  ;;  %v462_v11 = vsub.f32 %v1430_v21, %v434_v34  ;;  %v492_v12 = vsub.f32 %v1427_v20, %v434_v34 }
 0x110   : > { %v437_v36 = vmul.f32 0.0078125, %v429_v33 }
 0x111   : > { %v426_v37 = vpop.xlane.xlu1 %425  ;;  %v410_v38 = vpop.xlane.xlu0 %409 }
 0x112   : > { %v445_v41 = vsub.f32 %v437_v36, %v441_v35  ;;  %v430_v42 = vadd.f32 %v426_v37, %v410_v38  ;;  %v1030_v43 = vpop.eup %1029 }
 0x113   : > { %v493_v49 = vmul.f32 %v1030_v43, %v489_v40  ;;  %v463_v50 = vmul.f32 %v1030_v43, %v459_v39 }
 0x114   : > { %v449_v47 = vmax.f32 %v445_v41, 0.0  ;;  %v438_v48 = vmul.f32 0.0078125, %v430_v42 }
 0x115   : > { %v504_v56 = vmul.f32 %v848_v45, %v493_v49  ;;  %v474_v57 = vmul.f32 %v846_v46, %v463_v50 }
 0x116   : > { %v1032_v53 = vpop.eup %1031  ;;  %v453_v54 = vadd.f32 1e-05, %v449_v47  ;;  %v446_v55 = vsub.f32 %v438_v48, %v442_v44 }
 0x117   : > { %v494_v58 = vmul.f32 %v1032_v53, %v490_v5  ;;  %v464_v59 = vmul.f32 %v1032_v53, %v460_v1  ;;  %v515_v0 = vadd.f32 %v849_v51, %v504_v56  ;;  %v485_v61 = vadd.f32 %v847_v52, %v474_v57 }
 0x118   : > { %1033 = vrsqrt.f32 %v453_v54  ;;  %v450_v60 = vmax.f32 %v446_v55, 0.0 }
 0x119   : > { %v505_v2 = vmul.f32 %v848_v45, %v494_v58  ;;  %v475_v62 = vmul.f32 %v846_v46, %v464_v59  ;;  %903 = vmatprep.mubr.msk.f32.mxu1 %vm366_vm0, %v515_v0  ;;  %925 = vmatprep.mubr.msk.f32.mxu0 %vm366_vm0, %v485_v61 }
 0x11a   : > { %v454_v63 = vadd.f32 1e-05, %v450_v60 }
 0x11b   : > { %v516_v3 = vadd.f32 %v849_v51, %v505_v2  ;;  %v486_v4 = vadd.f32 %v847_v52, %v475_v62 }
 0x11c   : > { %1035 = vrsqrt.f32 %v454_v63 }
 0x11d   : > { %904 = vmatmul.mubr.msk.f32.vlgmr.msra.gmra.mrb[0].mxu1 %vm366_vm0, %v516_v3  ;;  %926 = vmatmul.mubr.msk.f32.vlgmr.msra.gmra.mrb[0].mxu0 %vm366_vm0, %v486_v4 }
 0x122   : > { %v1034_v8 = vpop.eup %1033 }
 0x123   : > { %v495_v9 = vmul.f32 %v1034_v8, %v491_v7  ;;  %v465_v10 = vmul.f32 %v1034_v8, %v461_v6 }
 0x125   : > { %v506_v13 = vmul.f32 %v848_v45, %v495_v9  ;;  %v476_v14 = vmul.f32 %v846_v46, %v465_v10 }
 0x126   : > { %v1036_v15 = vpop.eup %1035 }
 0x127   : > { %v517_v18 = vadd.f32 %v849_v51, %v506_v13  ;;  %v487_v19 = vadd.f32 %v847_v52, %v476_v14  ;;  %v496_v22 = vmul.f32 %v1036_v15, %v492_v12  ;;  %v466_v23 = vmul.f32 %v1036_v15, %v462_v11 }
 0x129   : > { %906 = vmatprep.mubr.msk.f32.mxu1 %vm366_vm0, %v517_v18  ;;  %928 = vmatprep.mubr.msk.f32.mxu0 %vm366_vm0, %v487_v19  ;;  %v507_v16 = vmul.f32 %v848_v45, %v496_v22  ;;  %v477_v17 = vmul.f32 %v846_v46, %v466_v23 }
 0x12b   : > { %v518_v24 = vadd.f32 %v849_v51, %v507_v16  ;;  %v488_v25 = vadd.f32 %v847_v52, %v477_v17 }
 0x12d   : > { %907 = vmatmul.mubr.msk.f32.gmra.mrb[2].mxu1 %vm366_vm0, %v518_v24  ;;  %929 = vmatmul.mubr.msk.f32.gmra.mrb[2].mxu0 %vm366_vm0, %v488_v25 }
 0x1f0   : > { %v905_v20 = vpop.f32.mrb[0].mxu1  ;;  %v927_v21 = vpop.f32.mrb[0].mxu0 }
 0x1f1   : > { %v716_v27 = vadd.f32 %v927_v21, %v905_v20  ;;  %v613_v28 = vpop.f32.mrb[1].mxu1  ;;  %v710_v29 = vpop.f32.mrb[1].mxu0 }
 0x1f2   : > { %v711_v30 = vadd.f32 %v710_v29, %v613_v28 }
 0x1f3   : > { %v737_v31 = vadd.f32 %v858_v26, %v716_v27 }
 0x1f4   : > { %v736_v32 = vadd.f32 %v858_v26, %v711_v30 }
 0x1f5   : > { %741 = vst.msk [vmem:[%s356_s17 + $0x8] sm:$0xff] %vm366_vm0, %v737_v31 }
 0x1f6   : > { %740 = vst.msk [vmem:[%s356_s17] sm:$0xff] %vm366_vm0, %v736_v32 }
 0x200   : > { %v908_v33 = vpop.f32.mrb[2].mxu1  ;;  %v930_v34 = vpop.f32.mrb[2].mxu0 }
 0x201   : > { %v726_v35 = vadd.f32 %v930_v34, %v908_v33  ;;  %v623_v36 = vpop.f32.mrb[3].mxu1  ;;  %v720_v37 = vpop.f32.mrb[3].mxu0 }
 0x202   : > { %v721_v38 = vadd.f32 %v720_v37, %v623_v36 }
 0x203   : > { %v739_v39 = vadd.f32 %v858_v26, %v726_v35 }
 0x204   : > { %v738_v40 = vadd.f32 %v858_v26, %v721_v38 }
 0x205   : > { %743 = vst.msk [vmem:[%s356_s17 + $0x18] sm:$0xff] %vm366_vm0, %v739_v39 }
 0x206   : > { %742 = vst.msk [vmem:[%s356_s17 + $0x10] sm:$0xff] %vm366_vm0, %v738_v40 }
 0x207 PF: > { %p19_p6 = scmp.ge.s32.totalorder %s1315_s16, 6   ;;  %s1522_s27 = smov %s1153_s28 }
 0x208   : > { %s1523_s28 = smov %s1157_s29  ;;  %s1524_s29 = smov %s1326_s20 }
 0x209   : > { %s1525_s30 = smov %s1315_s16  ;;  %21 = sbr.rel (!%p19_p6) target bundleno = 4 (0x4), region = 100 }
 0x210   :  { %766 = vsyncpa [#allocation3], 1 }
 0x211   :  { %768 = vsyncpa [#allocation3 + $0x1], 1 }
 0x212   :  { %769 = vsyncpa [#allocation5], 1 }

</bundles_post_ra>
